<compile_context>
chip_gen: v7x
topology: tpu7x:2x2x1
jax: 0.10.0
libtpu: 0.0.40
codegen_flags: <defaults>
</compile_context>

<pallas_src>
import jax
import jax.numpy as jnp
from jax.experimental import pallas as pl
from jax.experimental.pallas import tpu as pltpu


def _round_up(v: int, m: int) -> int:
    return ((v + m - 1) // m) * m


def _tpu_generation() -> int:
    try:
        kind = jax.devices()[0].device_kind.lower()
    except Exception:
        return 0
    for tag, gen in (("v7", 7), ("v6", 6), ("v5", 5), ("v4", 4)):
        if tag in kind:
            return gen
    return 0


def _gen_config(gen: int):
    """(default row tile, VMEM sizing budget, explicit scoped-VMEM limit)."""
    if gen >= 7:     # 64 MiB VMEM per TensorCore -> leave headroom
        return 512, 24 << 20, 48 << 20
    if gen == 6:     # 128 MiB physical, 32 MiB default scoped
        return 512, 28 << 20, 64 << 20
    # v5e / unknown: tightest scoped-VMEM default (16 MiB)
    return 256, 12 << 20, 32 << 20


def _linear_kernel(x_ref, w_ref, b_ref, o_ref, acc_ref):
    # x_ref : [tm, tk]      row/K tile of the batch (compute dtype)
    # w_ref : [tk, c_pad]   K tile of pre-transposed weight (VMEM-resident if grid_k==1)
    # b_ref : [1, c_pad]    bias, f32, resident
    # o_ref : [tm, c_pad]   lane-dense output tile (c_pad % 128 == 0 -> unmasked vst)
    # acc   : [tm, c_pad]   f32 accumulator scratch
    @pl.when(pl.program_id(1) == 0)
    def _():
        acc_ref[...] = jnp.zeros_like(acc_ref)

    acc_ref[...] += jnp.dot(x_ref[...], w_ref[...],
                            preferred_element_type=jnp.float32)

    @pl.when(pl.program_id(1) == pl.num_programs(1) - 1)
    def _():
        o_ref[...] = (acc_ref[...] + b_ref[...]).astype(o_ref.dtype)


def init_classifier_params(weight, bias, *, compute_dtype=jnp.float32):
    """One-time parameter prep (padding / transpose / cast hoisted out of forward).

    weight : [num_classes, in_dim]  (PyTorch nn.Linear layout)
    bias   : [num_classes]
    """
    num_classes, in_dim = weight.shape
    assert bias.shape == (num_classes,)

    gen = _tpu_generation()
    block_m, budget, vmem_limit = _gen_config(gen)
    cd = jnp.dtype(compute_dtype)
    cd_size = cd.itemsize

    # lane-dense class dim (unmasked stores, full MXU N utilization)
    c_pad = _round_up(max(num_classes, 128), 128)

    # K-tiling fallback only when the resident weight cannot live in VMEM
    # (count it double-buffered, in case Mosaic pipelines it anyway).
    if 2 * in_dim * c_pad * cd_size <= budget // 2 or in_dim <= 256:
        tk, k_pad = in_dim, in_dim
    else:
        tk = max(128, ((budget // 4) // (2 * c_pad * cd_size)) // 128 * 128)
        tk = min(tk, _round_up(in_dim, 128))
        k_pad = _round_up(in_dim, tk)

    # pad -> transpose once -> cast; every grid step is then a plain NN matmul.
    w_t = jnp.pad(weight, ((0, c_pad - num_classes), (0, k_pad - in_dim))).T
    w_t = w_t.astype(cd)
    b = jnp.pad(bias.astype(jnp.float32), (0, c_pad - num_classes)).reshape(1, c_pad)

    return dict(
        w_t=w_t, b=b, num_classes=num_classes, in_dim=in_dim,
        c_pad=c_pad, tk=tk, k_pad=k_pad, compute_dtype=cd,
        gen=gen, block_m=block_m, budget=budget, vmem_limit=vmem_limit,
    )


def classifier_forward(x, params, *, force_pallas=False):
    """y = x @ weight.T + bias  (PyTorch nn.Linear semantics).  x: [B, in_dim]."""
    B, in_dim = x.shape
    assert in_dim == params["in_dim"]
    C = params["num_classes"]
    c_pad, tk, k_pad = params["c_pad"], params["tk"], params["k_pad"]
    cd = params["compute_dtype"]
    out_dtype = x.dtype

    # Degenerate / sub-tile problems: pallas_call + pipeline setup overhead
    # exceeds the math -- let XLA fuse it.
    if not force_pallas and B * in_dim * c_pad < (1 << 18):
        y = jnp.dot(x.astype(cd), params["w_t"][:in_dim, :],
                    preferred_element_type=jnp.float32)
        return (y + params["b"]).astype(out_dtype)[:, :C]

    # TODO(synk): the per-call x cast/pad below is a small extra XLA op; for a
    # real model keep activations in the compute dtype upstream.
    x_c = x.astype(cd)
    if k_pad != in_dim:
        x_c = jnp.pad(x_c, ((0, 0), (0, k_pad - in_dim)))

    cd_size = jnp.dtype(cd).itemsize
    out_size = jnp.dtype(out_dtype).itemsize
    sublane = max(8, 32 // cd_size)           # 8 for f32, 16 for bf16

    tm = _round_up(min(params["block_m"], _round_up(B, sublane)), sublane)
    if params["gen"] >= 7:
        # keep grid_m >= 2 whenever possible so both v7x TensorCores get rows
        tm = min(tm, max(sublane, _round_up(-(-B // 2), sublane)))

    def footprint(tm_):
        return (2 * tm_ * tk * cd_size            # double-buffered x tile
                + 2 * tm_ * c_pad * out_size      # double-buffered out tile
                + 2 * tk * c_pad * cd_size        # weight tile (counted 2x, safe)
                + 2 * c_pad * 4                   # bias
                + tm_ * c_pad * 4)                # f32 accumulator scratch

    while tm > sublane and footprint(tm) > params["budget"]:
        tm = max(sublane, _round_up(tm // 2, sublane))

    b_pad = _round_up(B, tm)
    if b_pad != B:
        x_c = jnp.pad(x_c, ((0, b_pad - B), (0, 0)))

    grid = (b_pad // tm, k_pad // tk)
    w_resident = grid[1] == 1

    def make_spec(shape, index_map, single_buffer):
        if single_buffer:
            try:
                return pl.BlockSpec(shape, index_map,
                                    pipeline_mode=pl.Buffered(1))
            except Exception:
                pass
        return pl.BlockSpec(shape, index_map)

    def run(single_buffer):
        return pl.pallas_call(
            _linear_kernel,
            out_shape=jax.ShapeDtypeStruct((b_pad, c_pad), out_dtype),
            grid=grid,
            in_specs=[
                pl.BlockSpec((tm, tk), lambda i, k: (i, k)),          # x tile
                make_spec((tk, c_pad), lambda i, k: (k, 0),           # weight
                          single_buffer and w_resident),
                make_spec((1, c_pad), lambda i, k: (0, 0),            # bias
                          single_buffer),
            ],
            out_specs=pl.BlockSpec((tm, c_pad), lambda i, k: (i, 0)),
            scratch_shapes=[pltpu.VMEM((tm, c_pad), jnp.float32)],
            compiler_params=pltpu.CompilerParams(
                dimension_semantics=("parallel", "arbitrary"),
                vmem_limit_bytes=params["vmem_limit"],
            ),
        )(x_c, params["w_t"], params["b"])

    try:
        y_pad = run(True)      # single-buffered resident weight/bias
    except Exception:
        y_pad = run(False)     # fallback if pipeline_mode=Buffered(1) unsupported

    return y_pad[:B, :C]


if __name__ == "__main__":
    # Small shapes consistent with the module: Classifier(in_dim=32, num_classes=10)
    B, in_dim, num_classes = 8, 32, 10

    key = jax.random.PRNGKey(0)
    kx, kw, kb = jax.random.split(key, 3)

    x = jax.random.normal(kx, (B, in_dim), dtype=jnp.float32)
    bound = 1.0 / (in_dim ** 0.5)
    weight = jax.random.uniform(
        kw, (num_classes, in_dim), minval=-bound, maxval=bound, dtype=jnp.float32
    )
    bias = jax.random.uniform(
        kb, (num_classes,), minval=-bound, maxval=bound, dtype=jnp.float32
    )

    y_ref = x @ weight.T + bias

    # f32 compute path (near-exact)
    params_f32 = init_classifier_params(weight, bias, compute_dtype=jnp.float32)
    y = jax.block_until_ready(classifier_forward(x, params_f32, force_pallas=True))
    assert y.shape == (B, num_classes)
    assert jnp.allclose(y, y_ref, atol=1e-4, rtol=1e-4)

    # bf16 compute path (halved HBM traffic; f32 accumulation) -- looser tolerance
    params_bf16 = init_classifier_params(weight, bias, compute_dtype=jnp.bfloat16)
    y_bf = jax.block_until_ready(classifier_forward(x, params_bf16, force_pallas=True))
    assert y_bf.shape == (B, num_classes)
    assert jnp.allclose(y_bf, y_ref, atol=5e-2, rtol=5e-2)

    print("KERNEL_OK")
</pallas_src>

<mosaic_0001>
module attributes {stable_mosaic.version = 11 : i64} {
  func.func @_linear_kernel(%arg0: i32, %arg1: i32, %arg2: memref<8x32xf32, #tpu.memory_space<vmem>>, %arg3: memref<32x128xf32, #tpu.memory_space<vmem>>, %arg4: memref<1x128xf32, #tpu.memory_space<vmem>>, %arg5: memref<8x128xf32, #tpu.memory_space<vmem>>, %arg6: memref<8x128xf32, #tpu.memory_space<vmem>>) attributes {dimension_semantics = [#tpu.dimension_semantics<parallel>, #tpu.dimension_semantics<arbitrary>], iteration_bounds = array<i64: 1, 1>, scalar_prefetch = 0 : i64, scratch_operands = 1 : i64, tpu.core_type = #tpu.core_type<tc>, window_params = [{transform_indices = @transform_0, window_bounds = array<i64: 8, 32>}, {pipeline_mode = #tpu.pipeline_mode<synchronous>, transform_indices = @transform_1, window_bounds = array<i64: 32, 128>}, {pipeline_mode = #tpu.pipeline_mode<synchronous>, transform_indices = @transform_2, window_bounds = array<i64: 1, 128>}, {transform_indices = @transform_3, window_bounds = array<i64: 8, 128>}]} {
    %c0_i32 = arith.constant 0 : i32
    %0 = arith.cmpi eq, %arg1, %c0_i32 : i32
    %1 = arith.extui %0 : i1 to i32
    %c0_i32_0 = arith.constant 0 : i32
    %2 = arith.cmpi ne, %1, %c0_i32_0 : i32
    scf.if %2 {
      %cst_10 = arith.constant 0.000000e+00 : f32
      %12 = vector.broadcast %cst_10 : f32 to vector<8x128xf32>
      %c0_11 = arith.constant 0 : index
      %c0_12 = arith.constant 0 : index
      %13 = vector.load %arg6[%c0_11, %c0_12] : memref<8x128xf32, #tpu.memory_space<vmem>>, vector<8x128xf32>
      tpu.vector_store %arg6[%c0_11, %c0_12], %12 {strides = array<i32>} : memref<8x128xf32, #tpu.memory_space<vmem>>, vector<8x128xf32>,
    } else {
    }
    %c0 = arith.constant 0 : index
    %c0_1 = arith.constant 0 : index
    %3 = vector.load %arg6[%c0, %c0_1] : memref<8x128xf32, #tpu.memory_space<vmem>>, vector<8x128xf32>
    %c0_2 = arith.constant 0 : index
    %c0_3 = arith.constant 0 : index
    %4 = vector.load %arg2[%c0_2, %c0_3] : memref<8x32xf32, #tpu.memory_space<vmem>>, vector<8x32xf32>
    %c0_4 = arith.constant 0 : index
    %c0_5 = arith.constant 0 : index
    %5 = vector.load %arg3[%c0_4, %c0_5] : memref<32x128xf32, #tpu.memory_space<vmem>>, vector<32x128xf32>
    %cst = arith.constant dense<0.000000e+00> : vector<8x128xf32>
    %6 = tpu.matmul %4, %5, %cst {dimension_numbers = #tpu.dot_dimension_numbers<[1], [0], [0], [1], [0, 0, 1, 1], [], []>} : vector<8x32xf32>, vector<32x128xf32>, vector<8x128xf32> -> vector<8x128xf32>
    %7 = arith.addf %3, %6 : vector<8x128xf32>
    %c0_6 = arith.constant 0 : index
    %c0_7 = arith.constant 0 : index
    %8 = vector.load %arg6[%c0_6, %c0_7] : memref<8x128xf32, #tpu.memory_space<vmem>>, vector<8x128xf32>
    tpu.vector_store %arg6[%c0_6, %c0_7], %7 {strides = array<i32>} : memref<8x128xf32, #tpu.memory_space<vmem>>, vector<8x128xf32>,
    %c0_i32_8 = arith.constant 0 : i32
    %9 = arith.cmpi eq, %arg1, %c0_i32_8 : i32
    %10 = arith.extui %9 : i1 to i32
    %c0_i32_9 = arith.constant 0 : i32
    %11 = arith.cmpi ne, %10, %c0_i32_9 : i32
    scf.if %11 {
      %c0_10 = arith.constant 0 : index
      %c0_11 = arith.constant 0 : index
      %12 = vector.load %arg6[%c0_10, %c0_11] : memref<8x128xf32, #tpu.memory_space<vmem>>, vector<8x128xf32>
      %c0_12 = arith.constant 0 : index
      %c0_13 = arith.constant 0 : index
      %13 = vector.load %arg4[%c0_12, %c0_13] : memref<1x128xf32, #tpu.memory_space<vmem>>, vector<1x128xf32>
      %14 = vector.broadcast %13 : vector<1x128xf32> to vector<8x128xf32>
      %15 = arith.addf %12, %14 : vector<8x128xf32>
      %c0_14 = arith.constant 0 : index
      %c0_15 = arith.constant 0 : index
      %16 = vector.load %arg5[%c0_14, %c0_15] : memref<8x128xf32, #tpu.memory_space<vmem>>, vector<8x128xf32>
      tpu.vector_store %arg5[%c0_14, %c0_15], %15 {strides = array<i32>} : memref<8x128xf32, #tpu.memory_space<vmem>>, vector<8x128xf32>,
    } else {
    }
    return
  }
  func.func @transform_0(%arg0: i32, %arg1: i32) -> (i32, i32) {
    %c0_i32 = arith.constant 0 : i32
    return %arg0, %arg1 : i32, i32
  }
  func.func @transform_1(%arg0: i32, %arg1: i32) -> (i32, i32) {
    %c0_i32 = arith.constant 0 : i32
    %c0_i32_0 = arith.constant 0 : i32
    return %arg1, %c0_i32 : i32, i32
  }
  func.func @transform_2(%arg0: i32, %arg1: i32) -> (i32, i32) {
    %c0_i32 = arith.constant 0 : i32
    %c0_i32_0 = arith.constant 0 : i32
    %c0_i32_1 = arith.constant 0 : i32
    return %c0_i32, %c0_i32_0 : i32, i32
  }
  func.func @transform_3(%arg0: i32, %arg1: i32) -> (i32, i32) {
    %c0_i32 = arith.constant 0 : i32
    %c0_i32_0 = arith.constant 0 : i32
    return %arg0, %c0_i32 : i32, i32
  }
}

module attributes {stable_mosaic.version = 11 : i64} {
  func.func @_linear_kernel(%arg0: i32, %arg1: i32, %arg2: memref<8x32xf32, #tpu.memory_space<vmem>>, %arg3: memref<32x128xf32, #tpu.memory_space<vmem>>, %arg4: memref<1x128xf32, #tpu.memory_space<vmem>>, %arg5: memref<8x128xf32, #tpu.memory_space<vmem>>, %arg6: memref<8x128xf32, #tpu.memory_space<vmem>>) attributes {dimension_semantics = [#tpu.dimension_semantics<parallel>, #tpu.dimension_semantics<arbitrary>], iteration_bounds = array<i64: 1, 1>, scalar_prefetch = 0 : i64, scratch_operands = 1 : i64, tpu.core_type = #tpu.core_type<tc>, window_params = [{transform_indices = @transform_0, window_bounds = array<i64: 8, 32>}, {transform_indices = @transform_1, window_bounds = array<i64: 32, 128>}, {pipeline_mode = #tpu.pipeline_mode<synchronous>, transform_indices = @transform_2, window_bounds = array<i64: 1, 128>}, {transform_indices = @transform_3, window_bounds = array<i64: 8, 128>}]} {
    %c0_i32 = arith.constant 0 : i32
    %0 = arith.cmpi eq, %arg1, %c0_i32 : i32
    %1 = arith.extui %0 : i1 to i32
    %c0_i32_0 = arith.constant 0 : i32
    %2 = arith.cmpi ne, %1, %c0_i32_0 : i32
    scf.if %2 {
      %cst_10 = arith.constant 0.000000e+00 : f32
      %12 = vector.broadcast %cst_10 : f32 to vector<8x128xf32>
      %c0_11 = arith.constant 0 : index
      %c0_12 = arith.constant 0 : index
      %13 = vector.load %arg6[%c0_11, %c0_12] : memref<8x128xf32, #tpu.memory_space<vmem>>, vector<8x128xf32>
      tpu.vector_store %arg6[%c0_11, %c0_12], %12 {strides = array<i32>} : memref<8x128xf32, #tpu.memory_space<vmem>>, vector<8x128xf32>,
    } else {
    }
    %c0 = arith.constant 0 : index
    %c0_1 = arith.constant 0 : index
    %3 = vector.load %arg6[%c0, %c0_1] : memref<8x128xf32, #tpu.memory_space<vmem>>, vector<8x128xf32>
    %c0_2 = arith.constant 0 : index
    %c0_3 = arith.constant 0 : index
    %4 = vector.load %arg2[%c0_2, %c0_3] : memref<8x32xf32, #tpu.memory_space<vmem>>, vector<8x32xf32>
    %c0_4 = arith.constant 0 : index
    %c0_5 = arith.constant 0 : index
    %5 = vector.load %arg3[%c0_4, %c0_5] : memref<32x128xf32, #tpu.memory_space<vmem>>, vector<32x128xf32>
    %cst = arith.constant dense<0.000000e+00> : vector<8x128xf32>
    %6 = tpu.matmul %4, %5, %cst {dimension_numbers = #tpu.dot_dimension_numbers<[1], [0], [0], [1], [0, 0, 1, 1], [], []>} : vector<8x32xf32>, vector<32x128xf32>, vector<8x128xf32> -> vector<8x128xf32>
    %7 = arith.addf %3, %6 : vector<8x128xf32>
    %c0_6 = arith.constant 0 : index
    %c0_7 = arith.constant 0 : index
    %8 = vector.load %arg6[%c0_6, %c0_7] : memref<8x128xf32, #tpu.memory_space<vmem>>, vector<8x128xf32>
    tpu.vector_store %arg6[%c0_6, %c0_7], %7 {strides = array<i32>} : memref<8x128xf32, #tpu.memory_space<vmem>>, vector<8x128xf32>,
    %c0_i32_8 = arith.constant 0 : i32
    %9 = arith.cmpi eq, %arg1, %c0_i32_8 : i32
    %10 = arith.extui %9 : i1 to i32
    %c0_i32_9 = arith.constant 0 : i32
    %11 = arith.cmpi ne, %10, %c0_i32_9 : i32
    scf.if %11 {
      %c0_10 = arith.constant 0 : index
      %c0_11 = arith.constant 0 : index
      %12 = vector.load %arg6[%c0_10, %c0_11] : memref<8x128xf32, #tpu.memory_space<vmem>>, vector<8x128xf32>
      %c0_12 = arith.constant 0 : index
      %c0_13 = arith.constant 0 : index
      %13 = vector.load %arg4[%c0_12, %c0_13] : memref<1x128xf32, #tpu.memory_space<vmem>>, vector<1x128xf32>
      %14 = vector.broadcast %13 : vector<1x128xf32> to vector<8x128xf32>
      %15 = arith.addf %12, %14 : vector<8x128xf32>
      %c0_14 = arith.constant 0 : index
      %c0_15 = arith.constant 0 : index
      %16 = vector.load %arg5[%c0_14, %c0_15] : memref<8x128xf32, #tpu.memory_space<vmem>>, vector<8x128xf32>
      tpu.vector_store %arg5[%c0_14, %c0_15], %15 {strides = array<i32>} : memref<8x128xf32, #tpu.memory_space<vmem>>, vector<8x128xf32>,
    } else {
    }
    return
  }
  func.func @transform_0(%arg0: i32, %arg1: i32) -> (i32, i32) {
    %c0_i32 = arith.constant 0 : i32
    return %arg0, %arg1 : i32, i32
  }
  func.func @transform_1(%arg0: i32, %arg1: i32) -> (i32, i32) {
    %c0_i32 = arith.constant 0 : i32
    %c0_i32_0 = arith.constant 0 : i32
    return %arg1, %c0_i32 : i32, i32
  }
  func.func @transform_2(%arg0: i32, %arg1: i32) -> (i32, i32) {
    %c0_i32 = arith.constant 0 : i32
    %c0_i32_0 = arith.constant 0 : i32
    %c0_i32_1 = arith.constant 0 : i32
    return %c0_i32, %c0_i32_0 : i32, i32
  }
  func.func @transform_3(%arg0: i32, %arg1: i32) -> (i32, i32) {
    %c0_i32 = arith.constant 0 : i32
    %c0_i32_0 = arith.constant 0 : i32
    return %arg0, %c0_i32 : i32, i32
  }
}

</mosaic_0001>

<bundles_post_ra>
// kernel: tpu_custom_call.1
= control target key start
LH: loop header
LB: loop body
LE: loop exit
PB: predicated region body
PF: predicated region fallthrough
CT: control target
= control target key end

     0   :  { %8 = vsyncpa [#allocation4], 0  ;;  %s335_s0 = inlined_call_operand.hbm [shape: f32[8,32], index: 0, kind: input, shape index: {}]   ;;  %s336_s1 = inlined_call_operand.hbm [shape: f32[32,128], index: 1, kind: input, shape index: {}]   ;;  %s337_s2 = inlined_call_operand.vmem [shape: f32[1,128], index: 2, kind: input, shape index: {}]   ;;  %s338_s3 = inlined_call_operand.hbm [shape: f32[8,128], index: 3, kind: output, shape index: {}]  }
   0x1   :  { %9 = vsyncpa [#allocation7], 0 }
   0x2   :  { %10 = vsyncpa [#allocation5], 0  ;;  %s261_s12 = smov [#allocation3]   ;;  %s262_s14 = smov [#allocation6]  }
   0x3   :  { %s17_s13 = sshll.u32 %s261_s12, 4  ;;  %s26_s15 = sshll.u32 %s262_s14, 4  ;;  %s18_s13 = int_to_ptr.vmem [resolvable:$true] %s17_s13  ;;  %s289_s15 = int_to_ptr.vmem [resolvable:$true] %s26_s15 }
   0x4   :  { %s189_s18 = scalar_lea.hbm %s335_s0, 128 }
   0x5   :  { %p190_p0 = scmp.ne.s32.totalorder %s335_s0, %s189_s18  ;;  %p193_p1 = scmp.lt.u32.totalorder %s189_s18, %s335_s0 }
   0x7   :  { %p195_p2 = pnand %p193_p1, %p190_p0 }
   0x9   :  { %198 = shalt.err (!%p195_p2)
}
   0xa   :  { %s199_s23 = scalar_lea.vmem %s18_s13, 128  ;;  %p204_p4 = scmp.lt.s32.totalorder %s18_s13, %s18_s13 }
   0xb   :  { %p200_p3 = scmp.ne.s32.totalorder %s18_s13, %s199_s23  ;;  %p205_p5 = scmp.lt.s32.totalorder %s199_s23, %s199_s23 }
   0xd   :  { %p206_p6 = por %p205_p5, %p204_p4 }
   0xf   :  { %p207_p7 = pnand %p206_p6, %p200_p3 }
  0x11   :  { %210 = shalt.err (!%p207_p7)
}
  0x12   :  { %20 = dma.hbm_to_vmem [thread:$0]  %s335_s0, 128, %s18_s13, [#allocation4]  }
  0x13   :  { %s211_s28 = scalar_lea.hbm %s336_s1, 512 }
  0x14   :  { %p212_p8 = scmp.ne.s32.totalorder %s336_s1, %s211_s28  ;;  %p215_p9 = scmp.lt.u32.totalorder %s211_s28, %s336_s1 }
  0x16   :  { %p217_p10 = pnand %p215_p9, %p212_p8 }
  0x18   :  { %220 = shalt.err (!%p217_p10)
}
  0x19   :  { %s221_s6 = scalar_lea.vmem %s289_s15, 512  ;;  %p226_p12 = scmp.lt.s32.totalorder %s289_s15, %s289_s15 }
  0x1a   :  { %p222_p11 = scmp.ne.s32.totalorder %s289_s15, %s221_s6  ;;  %p227_p13 = scmp.lt.s32.totalorder %s221_s6, %s221_s6 }
  0x1c   :  { %p228_p0 = por %p227_p13, %p226_p12 }
  0x1e   :  { %p229_p1 = pnand %p228_p0, %p222_p11 }
  0x20   :  { %232 = shalt.err (!%p229_p1)
}
  0x21   :  { %s263_s0 = smov 128   ;;  %s264_s7 = smov 8  }
  0x22   :  { %32 = dma.hbm_to_vmem [thread:$0]  %s336_s1, 512, %s289_s15, [#allocation7], %s263_s0, %s263_s0, %s264_s7  }
  0x23   :  { %255 = dma.done.wait [#allocation4], 128  }
  0x24   :  { %256 = vsyncadd [#allocation4], 4294967168 }
  0x25   :  { %257 = dma.done.wait [#allocation7], 512  }
  0x26   :  { %258 = vsyncadd [#allocation7], 4294966784  ;;  %v265_v0 = vmov 0.0|0.0   ;;  %vm266_vm0 = vmmov 0   ;;  %v267_v1 = vmov 0.0   ;;  %v48_v2 = vld [vmem:[#allocation6] sm:$0xff] }
  0x27   :  { %175 = vmatprep.subr.bf16.mxu0 %v265_v0  ;;  %172 = vmatprep.mubr.msk.f32.mxu0 %vm266_vm0, %v267_v1  ;;  %v49_v3 = vld [vmem:[#allocation6 + $0x8] sm:$0xff]  ;;  %v50_v4 = vld [vmem:[#allocation6 + $0x10] sm:$0xff]  ;;  %v51_v6 = vld [vmem:[#allocation6 + $0x18] sm:$0xff]  ;;  %vm52_vm1 = vcmask 261120   ;;  %s268_s11 = smov [#allocation8]  }
  0x28   :  { %v176_v5 = vpack.c.bf16 %v49_v3, %v48_v2  ;;  %v179_v7 = vpack.c.bf16 %v51_v6, %v50_v4  ;;  %v47_v8 = vld [vmem:[#allocation3] sm:$0xff]  ;;  %s147_s12 = sshll.u32 %s268_s11, 4  ;;  %s148_s12 = int_to_ptr.vmem [resolvable:$true] %s147_s12 }
  0x29   :  { %v158_v9 = vld [vmem:[%s337_s2] ss:$0 sm:$0xff]  ;;  %s233_s13 = scalar_lea.vmem %s148_s12, 128  ;;  %p238_p3 = scmp.lt.s32.totalorder %s148_s12, %s148_s12 }
  0x2a   :  { %177 = vmatpush3.bf16.msra.mxu0 %v176_v5  ;;  %p234_p2 = scmp.ne.s32.totalorder %s148_s12, %s233_s13  ;;  %p239_p4 = scmp.lt.s32.totalorder %s233_s13, %s233_s13 }
  0x2b   :  { %178 = vmatprep.subr.bf16.mxu0 %v265_v0 }
  0x2c   :  { %p240_p5 = por %p239_p4, %p238_p3 }
  0x2e   :  { %180 = vmatpush3.bf16.msra.mxu0 %v179_v7  ;;  %p241_p6 = pnand %p240_p5, %p234_p2 }
  0x31   :  { %173 = vmatmul.mubr.msk.f32.vlgmr.msra.gmra.mrb[0].mxu0 %vm52_vm1, %v47_v8 }
 0x104   :  { %v122_v10 = vpop.f32.mrb[0].mxu0 }
 0x105   :  { %v139_v11 = vadd.f32 %v158_v9, %v122_v10  ;;  %v174_v12 = vpop.f32.mrb[1].mxu0 }
 0x107   :  { %140 = vst [vmem:[#allocation8] sm:$0xff] %v139_v11 }
 0x108   :  { %244 = shalt.err (!%p241_p6)
}
 0x109   :  { %s245_s16 = scalar_lea.hbm %s338_s3, 128 }
 0x10a   :  { %p246_p7 = scmp.ne.s32.totalorder %s338_s3, %s245_s16  ;;  %p249_p8 = scmp.lt.u32.totalorder %s245_s16, %s338_s3 }
 0x10c   :  { %p251_p9 = pnand %p249_p8, %p246_p7 }
 0x10e   :  { %254 = shalt.err (!%p251_p9)
}
 0x10f   :  { %150 = dma.vmem_to_hbm [thread:$0]  %s148_s12, 128, %s338_s3, [#allocation5]  }
 0x110   :  { %259 = dma.done.wait [#allocation5], 128  }
 0x111   :  { %260 = vsyncadd [#allocation5], 4294967168 }
 0x112   :  { %154 = vsyncpa [#allocation4], 1 }
 0x113   :  { %155 = vsyncpa [#allocation7], 1 }
 0x114   :  { %156 = vsyncpa [#allocation5], 1 }

// kernel: tpu_custom_call.1
= control target key start
LH: loop header
LB: loop body
LE: loop exit
PB: predicated region body
PF: predicated region fallthrough
CT: control target
= control target key end

     0   :  { %8 = vsyncpa [#allocation4], 0  ;;  %s335_s0 = inlined_call_operand.hbm [shape: f32[8,32], index: 0, kind: input, shape index: {}]   ;;  %s336_s1 = inlined_call_operand.hbm [shape: f32[32,128], index: 1, kind: input, shape index: {}]   ;;  %s337_s2 = inlined_call_operand.vmem [shape: f32[1,128], index: 2, kind: input, shape index: {}]   ;;  %s338_s3 = inlined_call_operand.hbm [shape: f32[8,128], index: 3, kind: output, shape index: {}]  }
   0x1   :  { %9 = vsyncpa [#allocation7], 0 }
   0x2   :  { %10 = vsyncpa [#allocation5], 0  ;;  %s261_s12 = smov [#allocation3]   ;;  %s262_s14 = smov [#allocation6]  }
   0x3   :  { %s17_s13 = sshll.u32 %s261_s12, 4  ;;  %s26_s15 = sshll.u32 %s262_s14, 4  ;;  %s18_s13 = int_to_ptr.vmem [resolvable:$true] %s17_s13  ;;  %s289_s15 = int_to_ptr.vmem [resolvable:$true] %s26_s15 }
   0x4   :  { %s189_s18 = scalar_lea.hbm %s335_s0, 128 }
   0x5   :  { %p190_p0 = scmp.ne.s32.totalorder %s335_s0, %s189_s18  ;;  %p193_p1 = scmp.lt.u32.totalorder %s189_s18, %s335_s0 }
   0x7   :  { %p195_p2 = pnand %p193_p1, %p190_p0 }
   0x9   :  { %198 = shalt.err (!%p195_p2)
}
   0xa   :  { %s199_s23 = scalar_lea.vmem %s18_s13, 128  ;;  %p204_p4 = scmp.lt.s32.totalorder %s18_s13, %s18_s13 }
   0xb   :  { %p200_p3 = scmp.ne.s32.totalorder %s18_s13, %s199_s23  ;;  %p205_p5 = scmp.lt.s32.totalorder %s199_s23, %s199_s23 }
   0xd   :  { %p206_p6 = por %p205_p5, %p204_p4 }
   0xf   :  { %p207_p7 = pnand %p206_p6, %p200_p3 }
  0x11   :  { %210 = shalt.err (!%p207_p7)
}
  0x12   :  { %20 = dma.hbm_to_vmem [thread:$0]  %s335_s0, 128, %s18_s13, [#allocation4]  }
  0x13   :  { %s211_s28 = scalar_lea.hbm %s336_s1, 512 }
  0x14   :  { %p212_p8 = scmp.ne.s32.totalorder %s336_s1, %s211_s28  ;;  %p215_p9 = scmp.lt.u32.totalorder %s211_s28, %s336_s1 }
  0x16   :  { %p217_p10 = pnand %p215_p9, %p212_p8 }
  0x18   :  { %220 = shalt.err (!%p217_p10)
}
  0x19   :  { %s221_s6 = scalar_lea.vmem %s289_s15, 512  ;;  %p226_p12 = scmp.lt.s32.totalorder %s289_s15, %s289_s15 }
  0x1a   :  { %p222_p11 = scmp.ne.s32.totalorder %s289_s15, %s221_s6  ;;  %p227_p13 = scmp.lt.s32.totalorder %s221_s6, %s221_s6 }
  0x1c   :  { %p228_p0 = por %p227_p13, %p226_p12 }
  0x1e   :  { %p229_p1 = pnand %p228_p0, %p222_p11 }
  0x20   :  { %232 = shalt.err (!%p229_p1)
}
  0x21   :  { %s263_s0 = smov 128   ;;  %s264_s7 = smov 8  }
  0x22   :  { %32 = dma.hbm_to_vmem [thread:$0]  %s336_s1, 512, %s289_s15, [#allocation7], %s263_s0, %s263_s0, %s264_s7  }
  0x23   :  { %255 = dma.done.wait [#allocation4], 128  }
  0x24   :  { %256 = vsyncadd [#allocation4], 4294967168 }
  0x25   :  { %257 = dma.done.wait [#allocation7], 512  }
  0x26   :  { %258 = vsyncadd [#allocation7], 4294966784  ;;  %v265_v0 = vmov 0.0|0.0   ;;  %vm266_vm0 = vmmov 0   ;;  %v267_v1 = vmov 0.0   ;;  %v48_v2 = vld [vmem:[#allocation6] sm:$0xff] }
  0x27   :  { %175 = vmatprep.subr.bf16.mxu0 %v265_v0  ;;  %172 = vmatprep.mubr.msk.f32.mxu0 %vm266_vm0, %v267_v1  ;;  %v49_v3 = vld [vmem:[#allocation6 + $0x8] sm:$0xff]  ;;  %v50_v4 = vld [vmem:[#allocation6 + $0x10] sm:$0xff]  ;;  %v51_v6 = vld [vmem:[#allocation6 + $0x18] sm:$0xff]  ;;  %vm52_vm1 = vcmask 261120   ;;  %s268_s11 = smov [#allocation8]  }
  0x28   :  { %v176_v5 = vpack.c.bf16 %v49_v3, %v48_v2  ;;  %v179_v7 = vpack.c.bf16 %v51_v6, %v50_v4  ;;  %v47_v8 = vld [vmem:[#allocation3] sm:$0xff]  ;;  %s147_s12 = sshll.u32 %s268_s11, 4  ;;  %s148_s12 = int_to_ptr.vmem [resolvable:$true] %s147_s12 }
  0x29   :  { %v158_v9 = vld [vmem:[%s337_s2] ss:$0 sm:$0xff]  ;;  %s233_s13 = scalar_lea.vmem %s148_s12, 128  ;;  %p238_p3 = scmp.lt.s32.totalorder %s148_s12, %s148_s12 }
  0x2a   :  { %177 = vmatpush3.bf16.msra.mxu0 %v176_v5  ;;  %p234_p2 = scmp.ne.s32.totalorder %s148_s12, %s233_s13  ;;  %p239_p4 = scmp.lt.s32.totalorder %s233_s13, %s233_s13 }
  0x2b   :  { %178 = vmatprep.subr.bf16.mxu0 %v265_v0 }
  0x2c   :  { %p240_p5 = por %p239_p4, %p238_p3 }
  0x2e   :  { %180 = vmatpush3.bf16.msra.mxu0 %v179_v7  ;;  %p241_p6 = pnand %p240_p5, %p234_p2 }
  0x31   :  { %173 = vmatmul.mubr.msk.f32.vlgmr.msra.gmra.mrb[0].mxu0 %vm52_vm1, %v47_v8 }
 0x104   :  { %v122_v10 = vpop.f32.mrb[0].mxu0 }
 0x105   :  { %v139_v11 = vadd.f32 %v158_v9, %v122_v10  ;;  %v174_v12 = vpop.f32.mrb[1].mxu0 }
 0x107   :  { %140 = vst [vmem:[#allocation8] sm:$0xff] %v139_v11 }
 0x108   :  { %244 = shalt.err (!%p241_p6)
}
 0x109   :  { %s245_s16 = scalar_lea.hbm %s338_s3, 128 }
 0x10a   :  { %p246_p7 = scmp.ne.s32.totalorder %s338_s3, %s245_s16  ;;  %p249_p8 = scmp.lt.u32.totalorder %s245_s16, %s338_s3 }
 0x10c   :  { %p251_p9 = pnand %p249_p8, %p246_p7 }
 0x10e   :  { %254 = shalt.err (!%p251_p9)
}
 0x10f   :  { %150 = dma.vmem_to_hbm [thread:$0]  %s148_s12, 128, %s338_s3, [#allocation5]  }
 0x110   :  { %259 = dma.done.wait [#allocation5], 128  }
 0x111   :  { %260 = vsyncadd [#allocation5], 4294967168 }
 0x112   :  { %154 = vsyncpa [#allocation4], 1 }
 0x113   :  { %155 = vsyncpa [#allocation7], 1 }
 0x114   :  { %156 = vsyncpa [#allocation5], 1 }

</bundles_post_ra>
